<compile_context>
chip_gen: v7x
topology: tpu7x:2x2x1
jax: 0.10.0
libtpu: 0.0.40
codegen_flags: <defaults>
</compile_context>

<pallas_src>
import functools

import jax
import jax.numpy as jnp
from jax import lax
from jax.experimental import pallas as pl
from jax.experimental.pallas import tpu as pltpu


def _cdiv(a, b):
    return -(-a // b)


def _frelu_kernel(x_ref, m_ref, w_ref, o_ref, *, W):
    # x_ref : (R_BLK, L)  rows = flattened (batch, channel); L = H*W on lanes
    # m_ref : (4, L) f32 border masks: [col>=1, col<=W-2, row>=1, row<=H-2]
    # w_ref : (R_BLK, 10) cols 0..8 = 3x3 depthwise taps (BN scale folded in),
    #                     col 9 = folded BN bias
    # o_ref : (R_BLK, L)
    L = x_ref.shape[-1]
    xf = x_ref[...].astype(jnp.float32)
    w = w_ref[...]
    mask_l = m_ref[0:1, :]
    mask_r = m_ref[1:2, :]
    mask_t = m_ref[2:3, :]
    mask_b = m_ref[3:4, :]

    # Cache the two +/-1 lane shifts once, column-masked once (shared by all
    # three kernel rows): 2 XLU rolls + 2 mask multiplies total.
    # roll(x, s)[p] = x[p - s]  ->  x[p + o] uses shift (-o) mod L.
    x_left = pltpu.roll(xf, 1, axis=1) * mask_l              # x[p-1], 0 where col==0
    x_right = pltpu.roll(xf, (L - 1) % L, axis=1) * mask_r   # x[p+1], 0 where col==W-1

    # Separable horizontal sums, one per kernel row (per-channel weights
    # broadcast across lanes).
    s_top = x_left * w[:, 0:1] + xf * w[:, 1:2] + x_right * w[:, 2:3]
    s_mid = x_left * w[:, 3:4] + xf * w[:, 4:5] + x_right * w[:, 5:6]
    s_bot = x_left * w[:, 6:7] + xf * w[:, 7:8] + x_right * w[:, 8:9]

    # Vertical combine: only two +/-W rolls, each row-masked once.  Column
    # masks stay valid because a +/-W shift does not change the column index.
    acc = s_mid
    acc = acc + pltpu.roll(s_top, W % L, axis=1) * mask_t         # needs row >= 1
    acc = acc + pltpu.roll(s_bot, (L - W) % L, axis=1) * mask_b   # needs row <= H-2

    o_ref[...] = jnp.maximum(xf, acc + w[:, 9:10]).astype(o_ref.dtype)


def _pick_row_block(rows, L, elem_bytes, budget=4 << 20):
    """Sublane-aligned row block keeping the x tile in the ~2-8 MiB sweet spot."""
    sub = 8 if elem_bytes >= 4 else 16          # 16-bit dtypes need 16-sublane tiles
    if rows <= sub:
        return rows                             # full-dim block is always legal
    rows_pad = _cdiv(rows, sub) * sub
    max_rb = max(sub, (budget // max(1, L * elem_bytes)) // sub * sub)
    rb = min(max_rb, rows_pad)
    # Give the v7x megacore (2 TCs) at least two steps on the parallel axis.
    if rb >= rows_pad and rows_pad >= 2 * sub:
        rb = _cdiv(rows_pad // 2, sub) * sub
    return rb
    # TODO(synk): add a row-aligned spatial (L) grid axis with halo handling for
    # very large H*W so a single 8-row tile cannot outgrow the VMEM budget.


def frelu_pallas(x_nchw, conv_w, gamma, beta, running_mean, running_var, eps=1e-5):
    """
    x_nchw : (N, C, H, W) float32 (or bfloat16)
    conv_w : (C, 1, 3, 3) depthwise conv weight (groups=C, no bias)
    gamma, beta, running_mean, running_var : (C,) BatchNorm2d params (eval mode)
    Returns (N, C, H, W) with the input dtype.
    """
    N, C, H, W = x_nchw.shape
    L = H * W
    rows = N * C

    # Contiguous collapse of (N, C, H, W) -> (N*C, H*W): free, keeps L lane-dense.
    x = x_nchw.reshape(rows, L)

    # Fold BN (eval mode): scale into the conv taps, bias kept separate.
    scale = gamma / jnp.sqrt(running_var + eps)
    bias = beta - running_mean * scale
    w9 = conv_w.reshape(C, 9).astype(jnp.float32) * scale[:, None]               # (C, 9)
    params = jnp.concatenate([w9, bias[:, None].astype(jnp.float32)], axis=1)    # (C, 10)
    params = jnp.tile(params, (N, 1))                                            # (rows, 10)

    # Precomputed float border masks, applied in-kernel as 4 multiplies total.
    flat = jnp.arange(L, dtype=jnp.int32)
    row_idx = flat // W
    col_idx = flat % W
    masks = jnp.stack(
        [col_idx >= 1, col_idx <= W - 2, row_idx >= 1, row_idx <= H - 2],
        axis=0,
    ).astype(jnp.float32)                                                        # (4, L)

    elem_bytes = x_nchw.dtype.itemsize
    R_BLK = _pick_row_block(rows, L, elem_bytes)
    grid = (_cdiv(rows, R_BLK),)

    # VMEM need ~ 2x in + 2x out pipeline buffers + ~4-6 live f32 temporaries.
    # Keep well under v7x's 64 MiB physical VMEM (fine on 128 MiB v5e/v6e).
    tile_bytes = R_BLK * L * 4
    vmem_limit = int(min(48 << 20, max(16 << 20, 10 * tile_bytes)))

    kernel = functools.partial(_frelu_kernel, W=W)

    out = pl.pallas_call(
        kernel,
        out_shape=jax.ShapeDtypeStruct((rows, L), x_nchw.dtype),
        grid_spec=pltpu.PrefetchScalarGridSpec(
            num_scalar_prefetch=0,
            grid=grid,
            in_specs=[
                pl.BlockSpec((R_BLK, L), lambda i: (i, 0)),    # x rows
                pl.BlockSpec((4, L), lambda i: (0, 0)),        # border masks
                pl.BlockSpec((R_BLK, 10), lambda i: (i, 0)),   # folded taps + bias
            ],
            out_specs=pl.BlockSpec((R_BLK, L), lambda i: (i, 0)),
        ),
        compiler_params=pltpu.CompilerParams(
            dimension_semantics=("parallel",),
            vmem_limit_bytes=vmem_limit,
        ),
    )(x, masks, params)

    return out.reshape(N, C, H, W)


def frelu_reference(x_nchw, conv_w, gamma, beta, running_mean, running_var, eps=1e-5):
    """Pure-JAX reference (NHWC depthwise conv via lax) for validation."""
    N, C, H, W = x_nchw.shape
    x = jnp.transpose(x_nchw, (0, 2, 3, 1))                     # NHWC
    w_hwio = jnp.transpose(conv_w, (2, 3, 1, 0))                # (3,3,1,C)
    y = lax.conv_general_dilated(
        x, w_hwio, window_strides=(1, 1), padding=((1, 1), (1, 1)),
        dimension_numbers=("NHWC", "HWIO", "NHWC"),
        feature_group_count=C)
    scale = gamma / jnp.sqrt(running_var + eps)
    bias = beta - running_mean * scale
    bn = y * scale.reshape(1, 1, 1, C) + bias.reshape(1, 1, 1, C)
    out = jnp.maximum(x, bn)
    return jnp.transpose(out, (0, 3, 1, 2))


if __name__ == "__main__":
    key = jax.random.PRNGKey(0)
    k_x, k_w, k_g, k_b, k_m, k_v = jax.random.split(key, 6)

    N, C, H, W = 2, 4, 16, 16
    x = jax.random.normal(k_x, (N, C, H, W), dtype=jnp.float32)

    # FReLU(c1=C, k=3): Conv2d(C, C, 3, 1, 1, groups=C, bias=False) + BatchNorm2d(C)
    conv_w = jax.random.normal(k_w, (C, 1, 3, 3), dtype=jnp.float32) * 0.1
    gamma = 1.0 + 0.1 * jax.random.normal(k_g, (C,), dtype=jnp.float32)
    beta = 0.1 * jax.random.normal(k_b, (C,), dtype=jnp.float32)
    running_mean = 0.1 * jax.random.normal(k_m, (C,), dtype=jnp.float32)
    running_var = 1.0 + 0.1 * jax.random.uniform(k_v, (C,), dtype=jnp.float32)

    out = frelu_pallas(x, conv_w, gamma, beta, running_mean, running_var)
    out = jax.block_until_ready(out)

    ref = frelu_reference(x, conv_w, gamma, beta, running_mean, running_var)
    assert out.shape == (N, C, H, W)
    assert jnp.allclose(out, ref, atol=1e-5, rtol=1e-5), "mismatch vs reference"

    print("KERNEL_OK")
</pallas_src>

<mosaic_0001>
module attributes {stable_mosaic.version = 11 : i64} {
  func.func @_frelu_kernel(%arg0: i32, %arg1: memref<8x256xf32, #tpu.memory_space<vmem>>, %arg2: memref<4x256xf32, #tpu.memory_space<vmem>>, %arg3: memref<8x10xf32, #tpu.memory_space<vmem>>, %arg4: memref<8x256xf32, #tpu.memory_space<vmem>>) attributes {dimension_semantics = [#tpu.dimension_semantics<parallel>], iteration_bounds = array<i64: 1>, scalar_prefetch = 0 : i64, scratch_operands = 0 : i64, tpu.core_type = #tpu.core_type<tc>, window_params = [{transform_indices = @transform_0, window_bounds = array<i64: 8, 256>}, {pipeline_mode = #tpu.pipeline_mode<synchronous>, transform_indices = @transform_1, window_bounds = array<i64: 4, 256>}, {transform_indices = @transform_2, window_bounds = array<i64: 8, 10>}, {transform_indices = @transform_3, window_bounds = array<i64: 8, 256>}]} {
    %c0 = arith.constant 0 : index
    %c0_0 = arith.constant 0 : index
    %0 = vector.load %arg1[%c0, %c0_0] : memref<8x256xf32, #tpu.memory_space<vmem>>, vector<8x256xf32>
    %c0_1 = arith.constant 0 : index
    %c0_2 = arith.constant 0 : index
    %1 = vector.load %arg3[%c0_1, %c0_2] : memref<8x10xf32, #tpu.memory_space<vmem>>, vector<8x10xf32>
    %c0_3 = arith.constant 0 : index
    %c0_4 = arith.constant 0 : index
    %2 = vector.load %arg2[%c0_3, %c0_4] : memref<4x256xf32, #tpu.memory_space<vmem>>, vector<1x256xf32>
    %c1 = arith.constant 1 : index
    %c0_5 = arith.constant 0 : index
    %3 = vector.load %arg2[%c1, %c0_5] : memref<4x256xf32, #tpu.memory_space<vmem>>, vector<1x256xf32>
    %c2 = arith.constant 2 : index
    %c0_6 = arith.constant 0 : index
    %4 = vector.load %arg2[%c2, %c0_6] : memref<4x256xf32, #tpu.memory_space<vmem>>, vector<1x256xf32>
    %c3 = arith.constant 3 : index
    %c0_7 = arith.constant 0 : index
    %5 = vector.load %arg2[%c3, %c0_7] : memref<4x256xf32, #tpu.memory_space<vmem>>, vector<1x256xf32>
    %c1_i32 = arith.constant 1 : i32
    %6 = tpu.dynamic_rotate %0 by %c1_i32 dim 1 : vector<8x256xf32>, i32 -> vector<8x256xf32>
    %7 = vector.broadcast %2 : vector<1x256xf32> to vector<8x256xf32>
    %8 = arith.mulf %6, %7 : vector<8x256xf32>
    %c255_i32 = arith.constant 255 : i32
    %9 = tpu.dynamic_rotate %0 by %c255_i32 dim 1 : vector<8x256xf32>, i32 -> vector<8x256xf32>
    %10 = vector.broadcast %3 : vector<1x256xf32> to vector<8x256xf32>
    %11 = arith.mulf %9, %10 : vector<8x256xf32>
    %12 = vector.extract_strided_slice %1 {offsets = [0, 0], sizes = [8, 1], strides = [1, 1]} : vector<8x10xf32> to vector<8x1xf32>
    %13 = vector.broadcast %12 : vector<8x1xf32> to vector<8x256xf32>
    %14 = arith.mulf %8, %13 : vector<8x256xf32>
    %15 = vector.extract_strided_slice %1 {offsets = [0, 1], sizes = [8, 1], strides = [1, 1]} : vector<8x10xf32> to vector<8x1xf32>
    %16 = vector.broadcast %15 : vector<8x1xf32> to vector<8x256xf32>
    %17 = arith.mulf %0, %16 : vector<8x256xf32>
    %18 = arith.addf %14, %17 : vector<8x256xf32>
    %19 = vector.extract_strided_slice %1 {offsets = [0, 2], sizes = [8, 1], strides = [1, 1]} : vector<8x10xf32> to vector<8x1xf32>
    %20 = vector.broadcast %19 : vector<8x1xf32> to vector<8x256xf32>
    %21 = arith.mulf %11, %20 : vector<8x256xf32>
    %22 = arith.addf %18, %21 : vector<8x256xf32>
    %23 = vector.extract_strided_slice %1 {offsets = [0, 3], sizes = [8, 1], strides = [1, 1]} : vector<8x10xf32> to vector<8x1xf32>
    %24 = vector.broadcast %23 : vector<8x1xf32> to vector<8x256xf32>
    %25 = arith.mulf %8, %24 : vector<8x256xf32>
    %26 = vector.extract_strided_slice %1 {offsets = [0, 4], sizes = [8, 1], strides = [1, 1]} : vector<8x10xf32> to vector<8x1xf32>
    %27 = vector.broadcast %26 : vector<8x1xf32> to vector<8x256xf32>
    %28 = arith.mulf %0, %27 : vector<8x256xf32>
    %29 = arith.addf %25, %28 : vector<8x256xf32>
    %30 = vector.extract_strided_slice %1 {offsets = [0, 5], sizes = [8, 1], strides = [1, 1]} : vector<8x10xf32> to vector<8x1xf32>
    %31 = vector.broadcast %30 : vector<8x1xf32> to vector<8x256xf32>
    %32 = arith.mulf %11, %31 : vector<8x256xf32>
    %33 = arith.addf %29, %32 : vector<8x256xf32>
    %34 = vector.extract_strided_slice %1 {offsets = [0, 6], sizes = [8, 1], strides = [1, 1]} : vector<8x10xf32> to vector<8x1xf32>
    %35 = vector.broadcast %34 : vector<8x1xf32> to vector<8x256xf32>
    %36 = arith.mulf %8, %35 : vector<8x256xf32>
    %37 = vector.extract_strided_slice %1 {offsets = [0, 7], sizes = [8, 1], strides = [1, 1]} : vector<8x10xf32> to vector<8x1xf32>
    %38 = vector.broadcast %37 : vector<8x1xf32> to vector<8x256xf32>
    %39 = arith.mulf %0, %38 : vector<8x256xf32>
    %40 = arith.addf %36, %39 : vector<8x256xf32>
    %41 = vector.extract_strided_slice %1 {offsets = [0, 8], sizes = [8, 1], strides = [1, 1]} : vector<8x10xf32> to vector<8x1xf32>
    %42 = vector.broadcast %41 : vector<8x1xf32> to vector<8x256xf32>
    %43 = arith.mulf %11, %42 : vector<8x256xf32>
    %44 = arith.addf %40, %43 : vector<8x256xf32>
    %c16_i32 = arith.constant 16 : i32
    %45 = tpu.dynamic_rotate %22 by %c16_i32 dim 1 : vector<8x256xf32>, i32 -> vector<8x256xf32>
    %46 = vector.broadcast %4 : vector<1x256xf32> to vector<8x256xf32>
    %47 = arith.mulf %45, %46 : vector<8x256xf32>
    %48 = arith.addf %33, %47 : vector<8x256xf32>
    %c240_i32 = arith.constant 240 : i32
    %49 = tpu.dynamic_rotate %44 by %c240_i32 dim 1 : vector<8x256xf32>, i32 -> vector<8x256xf32>
    %50 = vector.broadcast %5 : vector<1x256xf32> to vector<8x256xf32>
    %51 = arith.mulf %49, %50 : vector<8x256xf32>
    %52 = arith.addf %48, %51 : vector<8x256xf32>
    %53 = vector.extract_strided_slice %1 {offsets = [0, 9], sizes = [8, 1], strides = [1, 1]} : vector<8x10xf32> to vector<8x1xf32>
    %54 = vector.broadcast %53 : vector<8x1xf32> to vector<8x256xf32>
    %55 = arith.addf %52, %54 : vector<8x256xf32>
    %56 = arith.maximumf %0, %55 : vector<8x256xf32>
    %c0_8 = arith.constant 0 : index
    %c0_9 = arith.constant 0 : index
    %57 = vector.load %arg4[%c0_8, %c0_9] : memref<8x256xf32, #tpu.memory_space<vmem>>, vector<8x256xf32>
    tpu.vector_store %arg4[%c0_8, %c0_9], %56 {strides = array<i32>} : memref<8x256xf32, #tpu.memory_space<vmem>>, vector<8x256xf32>,
    return
  }
  func.func @transform_0(%arg0: i32) -> (i32, i32) {
    %c0_i32 = arith.constant 0 : i32
    %c0_i32_0 = arith.constant 0 : i32
    return %arg0, %c0_i32 : i32, i32
  }
  func.func @transform_1(%arg0: i32) -> (i32, i32) {
    %c0_i32 = arith.constant 0 : i32
    %c0_i32_0 = arith.constant 0 : i32
    %c0_i32_1 = arith.constant 0 : i32
    return %c0_i32, %c0_i32_0 : i32, i32
  }
  func.func @transform_2(%arg0: i32) -> (i32, i32) {
    %c0_i32 = arith.constant 0 : i32
    %c0_i32_0 = arith.constant 0 : i32
    return %arg0, %c0_i32 : i32, i32
  }
  func.func @transform_3(%arg0: i32) -> (i32, i32) {
    %c0_i32 = arith.constant 0 : i32
    %c0_i32_0 = arith.constant 0 : i32
    return %arg0, %c0_i32 : i32, i32
  }
}

</mosaic_0001>

<bundles_post_ra>
// kernel: tpu_custom_call.1
= control target key start
LH: loop header
LB: loop body
LE: loop exit
PB: predicated region body
PF: predicated region fallthrough
CT: control target
= control target key end

     0   :  { %8 = vsyncpa [#allocation3], 0  ;;  %s493_s0 = inlined_call_operand.hbm [shape: f32[8,256], index: 0, kind: input, shape index: {}]   ;;  %s494_s1 = inlined_call_operand.hbm [shape: f32[4,256], index: 1, kind: input, shape index: {}]   ;;  %s495_s2 = inlined_call_operand.hbm [shape: f32[8,10], index: 2, kind: input, shape index: {}]   ;;  %s496_s3 = inlined_call_operand.hbm [shape: f32[8,256], index: 3, kind: output, shape index: {}]  }
   0x1   :  { %9 = vsyncpa [#allocation6], 0 }
   0x2   :  { %10 = vsyncpa [#allocation4], 0  ;;  %s361_s12 = smov [#allocation5]   ;;  %s362_s14 = smov [#allocation2]  }
   0x3   :  { %s27_s13 = sshll.u32 %s361_s12, 4  ;;  %s17_s15 = sshll.u32 %s362_s14, 4  ;;  %s28_s13 = int_to_ptr.vmem [resolvable:$true] %s27_s13  ;;  %s18_s15 = int_to_ptr.vmem [resolvable:$true] %s17_s15 }
   0x4   :  { %s267_s18 = scalar_lea.hbm %s494_s1, 128 }
   0x5   :  { %p268_p0 = scmp.ne.s32.totalorder %s494_s1, %s267_s18  ;;  %p271_p1 = scmp.lt.u32.totalorder %s267_s18, %s494_s1 }
   0x7   :  { %p273_p2 = pnand %p271_p1, %p268_p0 }
   0x9   :  { %276 = shalt.err (!%p273_p2)
}
   0xa   :  { %s277_s23 = scalar_lea.vmem %s28_s13, 128  ;;  %p282_p4 = scmp.lt.s32.totalorder %s28_s13, %s28_s13 }
   0xb   :  { %p278_p3 = scmp.ne.s32.totalorder %s28_s13, %s277_s23  ;;  %p283_p5 = scmp.lt.s32.totalorder %s277_s23, %s277_s23 }
   0xd   :  { %p284_p6 = por %p283_p5, %p282_p4 }
   0xf   :  { %p285_p7 = pnand %p284_p6, %p278_p3 }
  0x11   :  { %288 = shalt.err (!%p285_p7)
}
  0x12   :  { %30 = dma.hbm_to_vmem [thread:$0]  %s494_s1, 128, %s28_s13, [#allocation6]  }
  0x13   :  { %s289_s28 = scalar_lea.hbm %s493_s0, 256 }
  0x14   :  { %p290_p8 = scmp.ne.s32.totalorder %s493_s0, %s289_s28  ;;  %p293_p9 = scmp.lt.u32.totalorder %s289_s28, %s493_s0 }
  0x16   :  { %p295_p10 = pnand %p293_p9, %p290_p8 }
  0x18   :  { %298 = shalt.err (!%p295_p10)
}
  0x19   :  { %s299_s6 = scalar_lea.vmem %s18_s15, 256  ;;  %p304_p12 = scmp.lt.s32.totalorder %s18_s15, %s18_s15 }
  0x1a   :  { %p300_p11 = scmp.ne.s32.totalorder %s18_s15, %s299_s6  ;;  %p305_p13 = scmp.lt.s32.totalorder %s299_s6, %s299_s6 }
  0x1c   :  { %p306_p0 = por %p305_p13, %p304_p12 }
  0x1e   :  { %p307_p1 = pnand %p306_p0, %p300_p11 }
  0x20   :  { %310 = shalt.err (!%p307_p1)
}
  0x21   :  { %20 = dma.hbm_to_vmem [thread:$0]  %s493_s0, 256, %s18_s15, [#allocation3]  }
  0x22   :  { %s363_s8 = smov [#allocation7]   ;;  %s311_s12 = scalar_lea.hbm %s495_s2, 128 }
  0x23   :  { %s37_s9 = sshll.u32 %s363_s8, 4  ;;  %p312_p2 = scmp.ne.s32.totalorder %s495_s2, %s311_s12  ;;  %s38_s9 = int_to_ptr.vmem [resolvable:$true] %s37_s9 }
  0x24   :  { %p315_p3 = scmp.lt.u32.totalorder %s311_s12, %s495_s2 }
  0x26   :  { %p317_p4 = pnand %p315_p3, %p312_p2 }
  0x28   :  { %320 = shalt.err (!%p317_p4)
}
  0x29   :  { %s321_s18 = scalar_lea.vmem %s38_s9, 128  ;;  %p326_p6 = scmp.lt.s32.totalorder %s38_s9, %s38_s9 }
  0x2a   :  { %p322_p5 = scmp.ne.s32.totalorder %s38_s9, %s321_s18  ;;  %p327_p7 = scmp.lt.s32.totalorder %s321_s18, %s321_s18 }
  0x2c   :  { %p328_p8 = por %p327_p7, %p326_p6 }
  0x2e   :  { %p329_p9 = pnand %p328_p8, %p322_p5 }
  0x30   :  { %332 = shalt.err (!%p329_p9)
}
  0x31   :  { %40 = dma.hbm_to_vmem [thread:$0]  %s495_s2, 128, %s38_s9, [#allocation6]  }
  0x32   :  { %355 = dma.done.wait [#allocation3], 256  }
  0x33   :  { %356 = vsyncadd [#allocation3], 4294967040 }
  0x34   :  { %357 = dma.done.wait [#allocation6], 256  }
  0x35   :  { %358 = vsyncadd [#allocation6], 4294967040  ;;  %v364_v0 = vmov 2   ;;  %v365_v1 = vmov 0   ;;  %v435_v2 = vld [vmem:[#allocation7] sm:$0xff]  ;;  %v366_v3 = vmov 6   ;;  %v64_v15 = vlaneseq }
  0x36   :  { %259 = vset.pattern.permute.xlu1 %v364_v0  ;;  %257 = vset.pattern.permute.xlu0 %v365_v1  ;;  %v367_v4 = vmov 1   ;;  %v441_v5 = vld [vmem:[#allocation2] sm:$0xff]  ;;  %v368_v6 = vmov 7   ;;  %s369_s2 = smov 1   ;;  %v370_v7 = vmov 8   ;;  %v445_v8 = vld [vmem:[#allocation2 + $0x8] sm:$0xff] }
  0x37   :  { %118 = vperm.xlu1 %259, %v435_v2   ;;  %104 = vperm.xlu0 %257, %v435_v2   ;;  %v371_v9 = vmov 4   ;;  %v372_v10 = vmov 3   ;;  %s373_s19 = smov 127   ;;  %v374_v11 = vmov 5   ;;  %v375_v12 = vmov 9   ;;  %s376_s20 = smov 16  }
  0x38   :  { %v71_v17 = vshrl.u32 %v64_v15, 7  ;;  %v454_v19 = vand.u32 127, %v64_v15  ;;  %v53_v23 = vld [vmem:[#allocation5] ss:$4 sm:$0x3]  ;;  %s377_s21 = smov 112  }
  0x39   :  { %v55_v30 = vld [vmem:[#allocation5 + $0x1] ss:$4 sm:$0x3]  ;;  %v57_v15 = vld [vmem:[#allocation5 + $0x2] ss:$4 sm:$0x3] }
  0x3a   :  { %v456_v21 = vsub.s32 0, %v71_v17  ;;  %v458_v22 = vsub.s32 1, %v71_v17  ;;  %vm66_vm0 = vcmp.lt.s32.totalorder %v454_v19, 1  ;;  %vm86_vm1 = vcmp.lt.s32.totalorder %v454_v19, 127  ;;  %s378_s22 = smov [#allocation8]  }
  0x3b   :  { %260 = vset.pattern.permute.xlu1 %v366_v3  ;;  %258 = vset.pattern.permute.xlu0 %v367_v4  ;;  %vm173_vm2 = vcmp.lt.s32.totalorder %v454_v19, 16  ;;  %vm195_vm3 = vcmp.lt.s32.totalorder %v454_v19, 112  ;;  %s229_s23 = sshll.u32 %s378_s22, 4  ;;  %s230_s23 = int_to_ptr.vmem [resolvable:$true] %s229_s23 }
  0x3c   :  { %148 = vperm.xlu1 %260, %v435_v2   ;;  %110 = vperm.xlu0 %258, %v435_v2   ;;  %v73_v25 = vrot.slane %v53_v23, %v456_v21  ;;  %v77_v26 = vrot.slane %v53_v23, %v458_v22  ;;  %v93_v34 = vrot.slane %v55_v30, %v456_v21  ;;  %s333_s24 = scalar_lea.vmem %s230_s23, 256  ;;  %p338_p11 = scmp.lt.s32.totalorder %s230_s23, %s230_s23 }
  0x3d   :  { %v97_v35 = vrot.slane %v55_v30, %v458_v22  ;;  %v184_v23 = vrot.slane %v57_v15, %v458_v22  ;;  %p334_p10 = scmp.ne.s32.totalorder %s230_s23, %s333_s24  ;;  %p339_p12 = scmp.lt.s32.totalorder %s333_s24, %s333_s24 }
  0x3f   :  { %p340_p13 = por %p339_p12, %p338_p11 }
  0x40   :  { %261 = vset.pattern.permute.xlu1 %v368_v6  ;;  %60 = vrot.lane.b32.xlu0 %v441_v5, %s369_s2 }
  0x41   :  { %154 = vperm.xlu1 %261, %v435_v2   ;;  %262 = vset.pattern.permute.xlu0 %v370_v7  ;;  %p341_p0 = pnand %p340_p13, %p334_p10 }
  0x44   :  { %162 = vperm.xlu0 %262, %v435_v2  }
  0x45   :  { %62 = vrot.lane.b32.xlu1 %v445_v8, %s369_s2 }
  0x46   :  { %264 = vset.pattern.permute.xlu1 %v371_v9 }
  0x48   :  { %263 = vset.pattern.permute.xlu0 %v372_v10 }
  0x49   :  { %82 = vrot.lane.b32.xlu1 %v441_v5, %s373_s19  ;;  %126 = vperm.xlu0 %263, %v435_v2  }
  0x4d   :  { %84 = vrot.lane.b32.xlu1 %v445_v8, %s373_s19  ;;  %266 = vset.pattern.permute.xlu0 %v375_v12 }
  0x51   :  { %132 = vperm.xlu1 %264, %v435_v2  }
  0x55   :  { %265 = vset.pattern.permute.xlu1 %v374_v11 }
  0x56   :  { %140 = vperm.xlu1 %265, %v435_v2  }
  0xb6   :  { %v119_v13 = vpop.permute.xlu1 %118  ;;  %v105_v14 = vpop.permute.xlu0 %104 }
  0xbb   :  { %v149_v16 = vpop.permute.xlu1 %148  ;;  %v111_v18 = vpop.permute.xlu0 %110 }
  0xbc   :  { %v113_v37 = vmul.f32 %v111_v18, %v441_v5  ;;  %v114_v38 = vmul.f32 %v111_v18, %v445_v8  ;;  %v59_v18 = vld [vmem:[#allocation5 + $0x3] ss:$4 sm:$0x3] }
  0xbf   :  { %v61_v24 = vpop.permute.xlu0 %60 }
  0xc0   :  { %v155_v20 = vpop.permute.xlu1 %154 }
  0xc1   :  { %v157_v52 = vmul.f32 %v155_v20, %v441_v5  ;;  %v158_v63 = vmul.f32 %v155_v20, %v445_v8  ;;  %v180_v20 = vrot.slane %v57_v15, %v456_v21 }
  0xc3   :  { %v163_v36 = vpop.permute.xlu0 %162 }
  0xc4   :  { %v63_v27 = vpop.permute.xlu1 %62 }
  0xc5   :  { %v67_v28 = vsel %vm66_vm0, %v61_v24, %v63_v27  ;;  %v68_v29 = vsel %vm66_vm0, %v63_v27, %v61_v24 }
  0xc6   :  { %v80_v31 = vmul.f32 %v73_v25, %v68_v29  ;;  %v81_v32 = vmul.f32 %v77_v26, %v67_v28  ;;  %v206_v26 = vrot.slane %v59_v18, %v458_v22 }
  0xc8   :  { %v83_v33 = vpop.permute.xlu1 %82  ;;  %v107_v39 = vmul.f32 %v105_v14, %v80_v31  ;;  %v108_v40 = vmul.f32 %v105_v14, %v81_v32  ;;  %v151_v46 = vmul.f32 %v149_v16, %v80_v31  ;;  %v127_v53 = vpop.permute.xlu0 %126  ;;  %v152_v60 = vmul.f32 %v149_v16, %v81_v32 }
  0xc9   :  { %v129_v61 = vmul.f32 %v127_v53, %v80_v31  ;;  %v130_v62 = vmul.f32 %v127_v53, %v81_v32 }
  0xca   :  { %v116_v48 = vadd.f32 %v114_v38, %v108_v40  ;;  %v115_v50 = vadd.f32 %v113_v37, %v107_v39  ;;  %v159_v59 = vadd.f32 %v157_v52, %v151_v46  ;;  %v160_v12 = vadd.f32 %v158_v63, %v152_v60 }
  0xcc   :  { %v85_v41 = vpop.permute.xlu1 %84 }
  0xcd   :  { %v87_v42 = vsel %vm86_vm1, %v83_v33, %v85_v41  ;;  %v88_v43 = vsel %vm86_vm1, %v85_v41, %v83_v33 }
  0xce   :  { %v100_v44 = vmul.f32 %v93_v34, %v87_v42  ;;  %v101_v45 = vmul.f32 %v97_v35, %v88_v43 }
  0xd0   :  { %v133_v47 = vpop.permute.xlu1 %132  ;;  %v122_v49 = vmul.f32 %v119_v13, %v101_v45  ;;  %v121_v51 = vmul.f32 %v119_v13, %v100_v44  ;;  %v165_v54 = vmul.f32 %v163_v36, %v100_v44  ;;  %v166_v3 = vmul.f32 %v163_v36, %v101_v45 }
  0xd1   :  { %v135_v55 = vmul.f32 %v133_v47, %v441_v5  ;;  %v136_v56 = vmul.f32 %v133_v47, %v445_v8 }
  0xd2   :  { %v124_v57 = vadd.f32 %v122_v49, %v116_v48  ;;  %v123_v58 = vadd.f32 %v121_v51, %v115_v50  ;;  %v167_v1 = vadd.f32 %v165_v54, %v159_v59  ;;  %v168_v13 = vadd.f32 %v166_v3, %v160_v12 }
  0xd3   :  { %v137_v4 = vadd.f32 %v135_v55, %v129_v61  ;;  %v138_v6 = vadd.f32 %v136_v56, %v130_v62 }
  0xd4   :  { %171 = vrot.lane.b32.xlu1 %v124_v57, %s376_s20  ;;  %169 = vrot.lane.b32.xlu0 %v123_v58, %s376_s20 }
  0xd5   :  { %v141_v0 = vpop.permute.xlu1 %140 }
  0xd6   :  { %v143_v7 = vmul.f32 %v141_v0, %v100_v44  ;;  %v144_v9 = vmul.f32 %v141_v0, %v101_v45 }
  0xd8   :  { %v145_v10 = vadd.f32 %v143_v7, %v137_v4  ;;  %v146_v11 = vadd.f32 %v144_v9, %v138_v6  ;;  %191 = vrot.lane.b32.xlu1 %v167_v1, %s377_s21  ;;  %214 = vperm.xlu0 %266, %v435_v2   ;;  %v202_v2 = vrot.slane %v59_v18, %v456_v21 }
  0xdc   :  { %193 = vrot.lane.b32.xlu1 %v168_v13, %s377_s21 }
 0x146   :  { %v172_v14 = vpop.permute.xlu1 %171  ;;  %v170_v16 = vpop.permute.xlu0 %169 }
 0x147   :  { %v174_v24 = vsel %vm173_vm2, %v170_v16, %v172_v14  ;;  %v175_v25 = vsel %vm173_vm2, %v172_v14, %v170_v16 }
 0x148   :  { %v187_v30 = vmul.f32 %v180_v20, %v175_v25  ;;  %v188_v31 = vmul.f32 %v184_v23, %v174_v24 }
 0x14a   :  { %v192_v17 = vpop.permute.xlu1 %191  ;;  %v189_v34 = vadd.f32 %v187_v30, %v145_v10  ;;  %v190_v35 = vadd.f32 %v188_v31, %v146_v11 }
 0x14e   :  { %v194_v27 = vpop.permute.xlu1 %193 }
 0x14f   :  { %v196_v28 = vsel %vm195_vm3, %v192_v17, %v194_v27  ;;  %v197_v29 = vsel %vm195_vm3, %v194_v27, %v192_v17 }
 0x150   :  { %v209_v32 = vmul.f32 %v202_v2, %v196_v28  ;;  %v210_v33 = vmul.f32 %v206_v26, %v197_v29 }
 0x152   :  { %v211_v36 = vadd.f32 %v209_v32, %v189_v34  ;;  %v212_v37 = vadd.f32 %v210_v33, %v190_v35 }
 0x157   :  { %v215_v38 = vpop.permute.xlu0 %214 }
 0x158   :  { %v217_v19 = vadd.f32 %v215_v38, %v211_v36  ;;  %v218_v39 = vadd.f32 %v215_v38, %v212_v37 }
 0x15a   :  { %v219_v21 = vmax.f32 %v441_v5, %v217_v19  ;;  %v220_v22 = vmax.f32 %v445_v8, %v218_v39 }
 0x15c   :  { %221 = vst [vmem:[#allocation8] sm:$0xff] %v219_v21  ;;  %222 = vst [vmem:[#allocation8 + $0x8] sm:$0xff] %v220_v22 }
 0x15d   :  { %344 = shalt.err (!%p341_p0)
}
 0x15e   :  { %s345_s27 = scalar_lea.hbm %s496_s3, 256 }
 0x15f   :  { %p346_p1 = scmp.ne.s32.totalorder %s496_s3, %s345_s27  ;;  %p349_p2 = scmp.lt.u32.totalorder %s345_s27, %s496_s3 }
 0x161   :  { %p351_p3 = pnand %p349_p2, %p346_p1 }
 0x163   :  { %354 = shalt.err (!%p351_p3)
}
 0x164   :  { %232 = dma.vmem_to_hbm [thread:$0]  %s230_s23, 256, %s496_s3, [#allocation4]  }
 0x165   :  { %359 = dma.done.wait [#allocation4], 256  }
 0x166   :  { %360 = vsyncadd [#allocation4], 4294967040 }
 0x167   :  { %236 = vsyncpa [#allocation3], 1 }
 0x168   :  { %237 = vsyncpa [#allocation6], 1 }
 0x169   :  { %238 = vsyncpa [#allocation4], 1 }

</bundles_post_ra>
